<compile_context>
chip_gen: v5e
topology: v5e:2x2
jax: 0.10.0
libtpu: 0.0.40
codegen_flags: <defaults>
</compile_context>

<pallas_src>
import functools

import jax
import jax.numpy as jnp
from jax.experimental import pallas as pl
from jax.experimental.pallas import tpu as pltpu


def _mlp_kernel(x_ref, w1_ref, b1_ref, w2_ref, b2_ref, o_ref, *, act_fnc):
    # x_ref : (TILE_R, pack*input_size)  VMEM, pipelined per grid step (lane-dense)
    # w1_ref: (pack*input_size, pack*inner)  VMEM, resident  (= kron(I, fc1.weight.T))
    # b1_ref: (1, pack*inner)            VMEM, resident  (= tile(b1, pack))
    # w2_ref: (pack*inner, pack)         VMEM, resident  (= kron(I, fc2.weight.T))
    # b2_ref: (1,)                       SMEM scalar
    # o_ref : (TILE_R, pack)             one fc2 output per packed batch row
    x = x_ref[...]

    # Layer 1 on the MXU with f32 accumulation (block-diagonal weight => each of
    # the `pack` batch rows packed into a lane-row gets its own 20-wide segment).
    h = jnp.dot(x, w1_ref[...], preferred_element_type=jnp.float32) + b1_ref[...]
    if act_fnc == "tanh":
        h = jnp.tanh(h)
    elif act_fnc == "sigmoid":
        h = jax.nn.sigmoid(h)
    else:  # default: ReLU
        h = jnp.maximum(h, 0.0)

    # Layer 2 also on the MXU via the block-diagonal w2': no cross-lane XLU reduce,
    # no sublane->lane relayout; result is (TILE_R, pack).
    y = jnp.dot(h, w2_ref[...], preferred_element_type=jnp.float32) + b2_ref[0]
    o_ref[...] = jax.nn.sigmoid(y).astype(o_ref.dtype)


def _round_up(v, m):
    return -(-v // m) * m


def mlp_forward(x, w1, b1, w2, b2, *, act_fnc="ReLU", tile_b=16384):
    """x: (B, input_size); w1: (inner, input_size); b1: (inner,);
    w2: (1, inner); b2: (1,).  Returns (B, 1), matching the PyTorch forward."""
    B, input_size = x.shape
    inner = w1.shape[0]
    out_dtype = x.dtype

    # ---- Row packing: put `pack` batch rows side by side in the 128-lane dim. ----
    pack = max(1, 128 // max(1, input_size))
    B_pad = _round_up(B, pack)
    if B_pad != B:
        x = jnp.pad(x, ((0, B_pad - B), (0, 0)))      # tiny pad only when needed
    rows = B_pad // pack
    xp = x.reshape(rows, pack * input_size)           # free: contiguous reshape

    # Block-diagonal weights / tiled bias (built once in the wrapper, VMEM-resident).
    eye = jnp.eye(pack, dtype=w1.dtype)
    w1_big = jnp.kron(eye, w1.T)                       # (pack*input_size, pack*inner)
    b1_big = jnp.tile(b1, pack).reshape(1, -1)         # (1, pack*inner)
    w2_big = jnp.kron(eye, w2.reshape(-1, 1))          # (pack*inner, pack)
    b2_s = b2.reshape(-1)                              # (1,) SMEM scalar

    # ---- Batch tile (in packed rows): big tiles to amortize per-step overhead. ----
    tile_rows = max(1, min(rows, max(1, tile_b // pack)))
    if tile_rows < rows:
        tile_rows = max(8, (tile_rows // 8) * 8)       # (8,128) tiling rule
    grid = (pl.cdiv(rows, tile_rows),)

    # Explicit scoped-VMEM limit sized from the double-buffered, lane-padded blocks;
    # capped below v7x's 64 MiB physical VMEM.
    itemsize = jnp.dtype(out_dtype).itemsize
    x_blk = tile_rows * _round_up(pack * input_size, 128) * itemsize
    o_blk = tile_rows * 128 * itemsize                 # pack lanes pad to 128
    vmem_limit = int(min(max(2 * (x_blk + o_blk) + (4 << 20), 32 << 20), 56 << 20))

    # Megacore: only CORE_PARALLEL changes codegen; enable it on v7x (2 TCs) and
    # fall back to plain PARALLEL on single-TC chips (v5e / v6e).
    kind = ""
    try:
        kind = jax.devices()[0].device_kind.lower()
    except Exception:  # pragma: no cover
        pass
    batch_sem = pltpu.CORE_PARALLEL if ("v7" in kind or "7x" in kind) else pltpu.PARALLEL

    kernel = functools.partial(_mlp_kernel, act_fnc=act_fnc)

    out = pl.pallas_call(
        kernel,
        out_shape=jax.ShapeDtypeStruct((rows, pack), out_dtype),
        grid=grid,
        in_specs=[
            pl.BlockSpec((tile_rows, pack * input_size), lambda i: (i, 0)),  # x, tiled
            pl.BlockSpec((pack * input_size, pack * inner), lambda i: (0, 0)),  # W1'
            pl.BlockSpec((1, pack * inner), lambda i: (0, 0)),                  # b1'
            pl.BlockSpec((pack * inner, pack), lambda i: (0, 0)),               # W2'
            pl.BlockSpec(memory_space=pltpu.MemorySpace.SMEM),                  # b2
        ],
        out_specs=pl.BlockSpec((tile_rows, pack), lambda i: (i, 0)),
        compiler_params=pltpu.CompilerParams(
            dimension_semantics=(batch_sem,),
            vmem_limit_bytes=vmem_limit,
        ),
    )(xp, w1_big, b1_big, w2_big, b2_s)

    return out.reshape(B_pad, 1)[:B]


def init_mlp_params(key, input_size, inner_neurons=20):
    """Deterministic init mimicking nn.Linear's U(-1/sqrt(fan_in), 1/sqrt(fan_in))."""
    k1, k2, k3, k4 = jax.random.split(key, 4)
    bound1 = 1.0 / jnp.sqrt(input_size)
    bound2 = 1.0 / jnp.sqrt(inner_neurons)
    w1 = jax.random.uniform(k1, (inner_neurons, input_size), jnp.float32, -bound1, bound1)
    b1 = jax.random.uniform(k2, (inner_neurons,), jnp.float32, -bound1, bound1)
    w2 = jax.random.uniform(k3, (1, inner_neurons), jnp.float32, -bound2, bound2)
    b2 = jax.random.uniform(k4, (1,), jnp.float32, -bound2, bound2)
    return w1, b1, w2, b2


def _reference(x, w1, b1, w2, b2, act_fnc="ReLU"):
    h = x @ w1.T + b1
    if act_fnc == "tanh":
        h = jnp.tanh(h)
    elif act_fnc == "sigmoid":
        h = jax.nn.sigmoid(h)
    else:
        h = jnp.maximum(h, 0.0)
    return jax.nn.sigmoid(h @ w2.T + b2)


if __name__ == "__main__":
    input_size = 32
    inner_neurons = 20

    key = jax.random.PRNGKey(0)
    k_x, k_p, k_x2, k_x3 = jax.random.split(key, 4)
    w1, b1, w2, b2 = init_mlp_params(k_p, input_size, inner_neurons)

    # 1) Small case (single block, grid of 1), ReLU.
    x = jax.random.normal(k_x, (8, input_size), jnp.float32)
    out = jax.block_until_ready(mlp_forward(x, w1, b1, w2, b2, act_fnc="ReLU"))
    ref = _reference(x, w1, b1, w2, b2, act_fnc="ReLU")
    assert out.shape == (8, 1)
    assert jnp.allclose(out, ref, atol=1e-5, rtol=1e-5)

    # 2) Gridded case: batch tiled across 4 pipelined grid steps, tanh activation.
    x2 = jax.random.normal(k_x2, (1024, input_size), jnp.float32)
    out2 = jax.block_until_ready(
        mlp_forward(x2, w1, b1, w2, b2, act_fnc="tanh", tile_b=256))
    ref2 = _reference(x2, w1, b1, w2, b2, act_fnc="tanh")
    assert out2.shape == (1024, 1)
    assert jnp.allclose(out2, ref2, atol=1e-4, rtol=1e-4)

    # 3) Batch not a multiple of the pack factor (exercises pad + slice), sigmoid.
    x3 = jax.random.normal(k_x3, (10, input_size), jnp.float32)
    out3 = jax.block_until_ready(mlp_forward(x3, w1, b1, w2, b2, act_fnc="sigmoid"))
    ref3 = _reference(x3, w1, b1, w2, b2, act_fnc="sigmoid")
    assert out3.shape == (10, 1)
    assert jnp.allclose(out3, ref3, atol=1e-4, rtol=1e-4)

    print("KERNEL_OK")
</pallas_src>

<mosaic_0001>
module attributes {stable_mosaic.version = 11 : i64} {
  func.func @_mlp_kernel(%arg0: i32, %arg1: memref<2x128xf32, #tpu.memory_space<vmem>>, %arg2: memref<128x80xf32, #tpu.memory_space<vmem>>, %arg3: memref<1x80xf32, #tpu.memory_space<vmem>>, %arg4: memref<80x4xf32, #tpu.memory_space<vmem>>, %arg5: memref<1xf32, #tpu.memory_space<smem>>, %arg6: memref<2x4xf32, #tpu.memory_space<vmem>>) attributes {dimension_semantics = [#tpu.dimension_semantics<parallel>], iteration_bounds = array<i64: 1>, scalar_prefetch = 0 : i64, scratch_operands = 0 : i64, tpu.core_type = #tpu.core_type<tc>, window_params = [{transform_indices = @transform_0, window_bounds = array<i64: 2, 128>}, {pipeline_mode = #tpu.pipeline_mode<synchronous>, transform_indices = @transform_1, window_bounds = array<i64: 128, 80>}, {pipeline_mode = #tpu.pipeline_mode<synchronous>, transform_indices = @transform_2, window_bounds = array<i64: 1, 80>}, {pipeline_mode = #tpu.pipeline_mode<synchronous>, transform_indices = @transform_3, window_bounds = array<i64: 80, 4>}, {transform_indices = @transform_4, window_bounds = array<i64: 1>}, {transform_indices = @transform_5, window_bounds = array<i64: 2, 4>}]} {
    %c0 = arith.constant 0 : index
    %c0_0 = arith.constant 0 : index
    %0 = vector.load %arg1[%c0, %c0_0] : memref<2x128xf32, #tpu.memory_space<vmem>>, vector<2x128xf32>
    %c0_1 = arith.constant 0 : index
    %c0_2 = arith.constant 0 : index
    %1 = vector.load %arg2[%c0_1, %c0_2] : memref<128x80xf32, #tpu.memory_space<vmem>>, vector<128x80xf32>
    %cst = arith.constant dense<0.000000e+00> : vector<2x80xf32>
    %2 = tpu.matmul %0, %1, %cst {dimension_numbers = #tpu.dot_dimension_numbers<[1], [0], [0], [1], [0, 0, 1, 1], [], []>} : vector<2x128xf32>, vector<128x80xf32>, vector<2x80xf32> -> vector<2x80xf32>
    %c0_3 = arith.constant 0 : index
    %c0_4 = arith.constant 0 : index
    %3 = vector.load %arg3[%c0_3, %c0_4] : memref<1x80xf32, #tpu.memory_space<vmem>>, vector<1x80xf32>
    %4 = vector.broadcast %3 : vector<1x80xf32> to vector<2x80xf32>
    %5 = arith.addf %2, %4 : vector<2x80xf32>
    %cst_5 = arith.constant 0.000000e+00 : f32
    %6 = vector.broadcast %cst_5 : f32 to vector<2x80xf32>
    %7 = arith.maximumf %5, %6 : vector<2x80xf32>
    %c0_6 = arith.constant 0 : index
    %c0_7 = arith.constant 0 : index
    %8 = vector.load %arg4[%c0_6, %c0_7] : memref<80x4xf32, #tpu.memory_space<vmem>>, vector<80x4xf32>
    %cst_8 = arith.constant dense<0.000000e+00> : vector<2x4xf32>
    %9 = tpu.matmul %7, %8, %cst_8 {dimension_numbers = #tpu.dot_dimension_numbers<[1], [0], [0], [1], [0, 0, 1, 1], [], []>} : vector<2x80xf32>, vector<80x4xf32>, vector<2x4xf32> -> vector<2x4xf32>
    %c0_9 = arith.constant 0 : index
    %10 = memref.load %arg5[%c0_9] : memref<1xf32, #tpu.memory_space<smem>>
    %11 = vector.broadcast %10 : f32 to vector<2x4xf32>
    %12 = arith.addf %9, %11 : vector<2x4xf32>
    %13 = arith.negf %12 : vector<2x4xf32>
    %14 = math.exp %13 : vector<2x4xf32>
    %cst_10 = arith.constant 1.000000e+00 : f32
    %15 = vector.broadcast %cst_10 : f32 to vector<2x4xf32>
    %16 = arith.addf %15, %14 : vector<2x4xf32>
    %17 = arith.divf %15, %16 : vector<2x4xf32>
    %c0_11 = arith.constant 0 : index
    %c0_12 = arith.constant 0 : index
    %18 = vector.load %arg6[%c0_11, %c0_12] : memref<2x4xf32, #tpu.memory_space<vmem>>, vector<2x4xf32>
    tpu.vector_store %arg6[%c0_11, %c0_12], %17 {strides = array<i32>} : memref<2x4xf32, #tpu.memory_space<vmem>>, vector<2x4xf32>,
    return
  }
  func.func @transform_0(%arg0: i32) -> (i32, i32) {
    %c0_i32 = arith.constant 0 : i32
    %c0_i32_0 = arith.constant 0 : i32
    return %arg0, %c0_i32 : i32, i32
  }
  func.func @transform_1(%arg0: i32) -> (i32, i32) {
    %c0_i32 = arith.constant 0 : i32
    %c0_i32_0 = arith.constant 0 : i32
    %c0_i32_1 = arith.constant 0 : i32
    return %c0_i32, %c0_i32_0 : i32, i32
  }
  func.func @transform_2(%arg0: i32) -> (i32, i32) {
    %c0_i32 = arith.constant 0 : i32
    %c0_i32_0 = arith.constant 0 : i32
    %c0_i32_1 = arith.constant 0 : i32
    return %c0_i32, %c0_i32_0 : i32, i32
  }
  func.func @transform_3(%arg0: i32) -> (i32, i32) {
    %c0_i32 = arith.constant 0 : i32
    %c0_i32_0 = arith.constant 0 : i32
    %c0_i32_1 = arith.constant 0 : i32
    return %c0_i32, %c0_i32_0 : i32, i32
  }
  func.func @transform_4(%arg0: i32) -> i32 {
    %c0_i32 = arith.constant 0 : i32
    %c0_i32_0 = arith.constant 0 : i32
    return %c0_i32 : i32
  }
  func.func @transform_5(%arg0: i32) -> (i32, i32) {
    %c0_i32 = arith.constant 0 : i32
    %c0_i32_0 = arith.constant 0 : i32
    return %arg0, %c0_i32 : i32, i32
  }
}

</mosaic_0001>

<bundles_post_ra>
// kernel: tpu_custom_call.1
= control target key start
LH: loop header
LB: loop body
LE: loop exit
PB: predicated region body
PF: predicated region fallthrough
CT: control target
= control target key end

     0   :  { %s292_s0 = inlined_call_operand.vmem [shape: f32[2,128], index: 0, kind: input, shape index: {}]   ;;  %s293_s1 = inlined_call_operand.vmem [shape: f32[128,80], index: 1, kind: input, shape index: {}]   ;;  %s294_s2 = inlined_call_operand.vmem [shape: f32[1,80], index: 2, kind: input, shape index: {}]   ;;  %s295_s3 = inlined_call_operand.vmem [shape: f32[80,4], index: 3, kind: input, shape index: {}]   ;;  %s296_s4 = inlined_call_operand.<no memory space> [shape: f32[1], index: 4, kind: input, shape index: {}]   ;;  %s297_s5 = inlined_call_operand.hbm [shape: f32[2,4], index: 5, kind: output, shape index: {}]  }
   0x1   :  { %v38_v0 = vld [vmem:[%s293_s1 + $0x78] sm:$0xff]  ;;  %v37_v1 = vld [vmem:[%s293_s1 + $0x70] sm:$0xff]  ;;  %v36_v2 = vld [vmem:[%s293_s1 + $0x68] sm:$0xff] }
   0x2   :  { %43 = vmatpush.msra.mxu0 %v38_v0  ;;  %v35_v3 = vld [vmem:[%s293_s1 + $0x60] sm:$0xff]  ;;  %v73_v4 = vld [vmem:[%s295_s3 + $0x48] sm:$0xff]  ;;  %v34_v5 = vld [vmem:[%s293_s1 + $0x58] sm:$0xff] }
   0x3   :  { %86 = vmatpush.msra.mxu1 %v73_v4  ;;  %v72_v6 = vld [vmem:[%s295_s3 + $0x40] sm:$0xff]  ;;  %v71_v7 = vld [vmem:[%s295_s3 + $0x38] sm:$0xff]  ;;  %v33_v8 = vld [vmem:[%s293_s1 + $0x50] sm:$0xff] }
   0x4   :  { %44 = vmatpush.msra.mxu0 %v37_v1 }
   0x5   :  { %87 = vmatpush.msra.mxu1 %v72_v6 }
   0x6   :  { %45 = vmatpush.msra.mxu0 %v36_v2 }
   0x8   :  { %46 = vmatpush.msra.mxu0 %v35_v3 }
   0x9   :  { %11 = vsyncpa [#allocation4], 0  ;;  %v70_v9 = vld [vmem:[%s295_s3 + $0x30] sm:$0xff]  ;;  %v32_v10 = vld [vmem:[%s293_s1 + $0x48] sm:$0xff]  ;;  %88 = vmatpush.msra.mxu1 %v71_v7  ;;  %vm76_vm0 = vcmask 654336   ;;  %v75_v31 = vstv %s296_s4  ;;  %s128_s4 = sshll.u32 %s297_s5, 4  ;;  %s129_s4 = int_to_ptr.hbm [resolvable:$true] %s128_s4 }
   0xa   :  { %47 = vmatpush.msra.mxu0 %v34_v5  ;;  %v69_v11 = vld [vmem:[%s295_s3 + $0x28] sm:$0xff]  ;;  %v31_v12 = vld [vmem:[%s293_s1 + $0x40] sm:$0xff]  ;;  %v30_v14 = vld [vmem:[%s293_s1 + $0x38] sm:$0xff]  ;;  %vm119_vm4 = vcmask 25600  }
   0xb   :  { %89 = vmatpush.msra.mxu1 %v70_v9  ;;  %v68_v13 = vld [vmem:[%s295_s3 + $0x20] sm:$0xff]  ;;  %v67_v15 = vld [vmem:[%s295_s3 + $0x18] sm:$0xff]  ;;  %v29_v16 = vld [vmem:[%s293_s1 + $0x30] sm:$0xff] }
   0xc   :  { %48 = vmatpush.msra.mxu0 %v33_v8  ;;  %v28_v17 = vld [vmem:[%s293_s1 + $0x28] sm:$0xff]  ;;  %v27_v18 = vld [vmem:[%s293_s1 + $0x20] sm:$0xff]  ;;  %v26_v19 = vld [vmem:[%s293_s1 + $0x18] sm:$0xff] }
   0xd   :  { %90 = vmatpush.msra.mxu1 %v69_v11  ;;  %v25_v20 = vld [vmem:[%s293_s1 + $0x10] sm:$0xff]  ;;  %v24_v21 = vld [vmem:[%s293_s1 + $0x8] sm:$0xff]  ;;  %v23_v22 = vld [vmem:[%s293_s1] sm:$0xff] }
   0xe   :  { %49 = vmatpush.msra.mxu0 %v32_v10  ;;  %v22_v23 = vld [vmem:[%s292_s0] sm:$0x3]  ;;  %v66_v24 = vld [vmem:[%s295_s3 + $0x10] sm:$0xff]  ;;  %v65_v25 = vld [vmem:[%s295_s3 + $0x8] sm:$0xff] }
   0xf   :  { %91 = vmatpush.msra.mxu1 %v68_v13  ;;  %v64_v26 = vld [vmem:[%s295_s3] sm:$0xff] }
  0x10   :  { %50 = vmatpush.msra.mxu0 %v31_v12  ;;  %v140_v27 = vld [vmem:[%s294_s2] ss:$0 sm:$0xff]  ;;  %s171_s2 = smov [#allocation3]  }
  0x11   :  { %92 = vmatpush.msra.mxu1 %v67_v15  ;;  %s126_s3 = sshll.u32 %s171_s2, 4  ;;  %s127_s3 = int_to_ptr.vmem [resolvable:$true] %s126_s3 }
  0x12   :  { %51 = vmatpush.msra.mxu0 %v30_v14 }
  0x13   :  { %93 = vmatpush.msra.mxu1 %v66_v24 }
  0x14   :  { %52 = vmatpush.msra.mxu0 %v29_v16 }
  0x15   :  { %94 = vmatpush.msra.mxu1 %v65_v25 }
  0x16   :  { %53 = vmatpush.msra.mxu0 %v28_v17 }
  0x17   :  { %95 = vmatpush.msra.mxu1 %v64_v26 }
  0x18   :  { %54 = vmatpush.msra.mxu0 %v27_v18 }
  0x1a   :  { %55 = vmatpush.msra.mxu0 %v26_v19 }
  0x1c   :  { %56 = vmatpush.msra.mxu0 %v25_v20 }
  0x1e   :  { %57 = vmatpush.msra.mxu0 %v24_v21 }
  0x20   :  { %58 = vmatpush.msra.mxu0 %v23_v22 }
  0x21   :  { %59 = vmatmul.f32.vlgmr.msra.gmra.mxu0 %v22_v23 }
  0x9e   :  { %v60_v28 = vpop.f32.mrf.mxu0 }
  0x9f   :  { %v61_v29 = vadd.f32 %v140_v27, %v60_v28 }
  0xa1   :  { %v63_v30 = vmax.f32 %v61_v29, 0.0 }
  0xa3   :  { %137 = vmatmul.msk.f32.vlgmr.msra.gmra.mxu1 %vm76_vm0, %v63_v30 }
 0x120   :  { %v97_v32 = vpop.f32.mrf.mxu1 }
 0x121   :  { %v98_v33 = vadd.f32 %v97_v32, %v75_v31 }
 0x123   :  { %v138_v34 = vmul.f32 -1.442695, %v98_v33 }
 0x125   :  { %141 = vpow2.f32 %v138_v34 }
 0x12b   :  { %v142_v35 = vpop.eup %141 }
 0x12c   :  { %v103_v36 = vadd.f32 1.0, %v142_v35 }
 0x12e   :  { %143 = vrcp.f32 %v103_v36  ;;  %v115_v40 = vand.u32 2147483648, %v103_v36  ;;  %v113_v42 = vand.u32 2147483647, %v103_v36  ;;  %vm109_vm2 = vweird.f32 %v103_v36 }
 0x130   :  { %v116_v44 = vor.u32 1.1754944e-38, %v115_v40  ;;  %vm114_vm5 = vcmp.eq.f32.partialorder %v113_v42, 8.507059e+37 }
 0x134   :  { %v144_v37 = vpop.eup %143 }
 0x135   :  { %v105_v38 = vmul.f32 %v144_v37, %v103_v36  ;;  %vm110_vm1 = vweird.f32 %v144_v37 }
 0x136   :  { %vm111_vm3 = vmor %vm109_vm2, %vm110_vm1 }
 0x137   :  { %v106_v39 = vsub.f32 1.0, %v105_v38 }
 0x139   :  { %v107_v41 = vmul.f32 %v144_v37, %v106_v39 }
 0x13b   :  { %v108_v43 = vadd.f32 %v144_v37, %v107_v41 }
 0x13d   :  { %v112_v45 = vsel %vm111_vm3, %v144_v37, %v108_v43 }
 0x13e   :  { %v117_v46 = vsel %vm114_vm5, %v116_v44, %v112_v45 }
 0x13f   :  { %120 = vst.msk [vmem:[#allocation3] sm:$0x3] %vm119_vm4, %v117_v46 }
 0x140   :  { %131 = dma.vmem_to_hbm [thread:$0]  %s127_s3, 32, %s129_s4, [#allocation4]  }
 0x141   :  { %169 = dma.done.wait [#allocation4], 32  }
 0x142   :  { %170 = vsyncadd [#allocation4], 4294967264 }
 0x143   :  { %136 = vsyncpa [#allocation4], 1 }

</bundles_post_ra>
